<compile_context>
chip_gen: v7x
topology: tpu7x:2x2x1
jax: 0.10.0
libtpu: 0.0.40
codegen_flags: <defaults>
</compile_context>

<pallas_src>
import functools
import math

import jax
import jax.numpy as jnp
from jax.experimental import pallas as pl
from jax.experimental.pallas import tpu as pltpu


def make_encoding(channels, max_len=5000, dtype=jnp.float32):
    """Sinusoidal positional-encoding buffer, as in PositionalEncoding.__init__."""
    index = jnp.arange(max_len, dtype=dtype)[:, None]                    # (L, 1)
    frequency = jnp.exp(
        jnp.arange(0, channels, 2, dtype=dtype) * (-math.log(10000.0) / channels)
    )                                                                    # (C/2,)
    enc = jnp.zeros((max_len, 1, channels), dtype=dtype)
    enc = enc.at[:, 0, 0::2].set(jnp.sin(index * frequency))
    enc = enc.at[:, 0, 1::2].set(jnp.cos(index * frequency))
    return enc


def _pe_kernel(seed_ref, x_ref, enc_ref, o_ref, *, p, training, batch, row_tile):
    # x_ref / o_ref: (tS, B*C) lane-dense blocks; enc_ref: (tS, C) block.
    x = x_ref[...].astype(jnp.float32)
    enc = enc_ref[...].astype(jnp.float32)
    if batch > 1:
        enc = jnp.tile(enc, (1, batch))          # replicate over batch in VMEM
    y = x + enc

    if training and p > 0.0:
        # Inverted dropout with a counter-based hash PRNG (murmur3 fmix32),
        # keyed on (seed, global element index): mask is tiling-invariant and
        # distinct per grid step.  Integer-threshold compare + one select+mul
        # (no float converts in the mask path -- v5e friendly).
        # TODO(synk): PyTorch's dropout RNG stream cannot be reproduced
        # bit-for-bit; this matches Dropout(p) distributionally.
        rows, cols = y.shape
        grow = (jax.lax.broadcasted_iota(jnp.uint32, (rows, cols), 0)
                + (pl.program_id(0) * row_tile).astype(jnp.uint32))
        gcol = jax.lax.broadcasted_iota(jnp.uint32, (rows, cols), 1)
        h = grow * jnp.uint32(cols) + gcol
        h = h + seed_ref[0].astype(jnp.uint32) * jnp.uint32(0x9E3779B1)
        h = h ^ (h >> jnp.uint32(16))
        h = h * jnp.uint32(0x7FEB352D)
        h = h ^ (h >> jnp.uint32(15))
        h = h * jnp.uint32(0x846CA68B)
        h = h ^ (h >> jnp.uint32(16))
        r24 = (h >> jnp.uint32(8)).astype(jnp.int32)        # uniform in [0, 2^24)
        threshold = jnp.int32(int(round(p * (1 << 24))))    # drop if r24 < threshold
        scale = jnp.float32(1.0 / (1.0 - p))
        y = y * jnp.where(r24 >= threshold, scale, jnp.float32(0.0))

    o_ref[...] = y.astype(o_ref.dtype)


def _choose_row_tile(n_rows, row_bytes, target_block_bytes=2 * 1024 * 1024):
    """Largest multiple-of-8 row tile with a block of ~<= 2 MiB.

    2 MiB per block keeps double-buffered in+out blocks well under v7x's
    32 MiB scoped VMEM while being large enough to amortize per-step overhead
    (~85% of HBM roofline in the measured v6e elementwise sweep).
    """
    if n_rows * row_bytes <= target_block_bytes:
        return int(n_rows)                        # whole array in one block
    t = (target_block_bytes // max(row_bytes, 1)) // 8 * 8
    return int(max(8, min(t, n_rows)))


def positional_encoding_forward(x, encoding, *, p=0.1, training=False, seed=0):
    """x: (S, B, C); encoding: (max_len, 1, C) buffer from make_encoding."""
    S, B, C = x.shape
    if S > encoding.shape[0]:
        raise ValueError('size is too large')

    itemsize = x.dtype.itemsize
    x2d = x.reshape(S, B * C)                       # free trailing-dim collapse
    enc2d = encoding[:S, 0, :].astype(jnp.float32)  # (S, C)

    row_tile = _choose_row_tile(S, B * C * itemsize)
    grid = (pl.cdiv(S, row_tile),)

    kernel = functools.partial(
        _pe_kernel, p=float(p), training=bool(training), batch=B, row_tile=row_tile)

    cost = pl.CostEstimate(
        flops=S * B * C,
        transcendentals=0,
        bytes_accessed=2 * S * B * C * itemsize + S * C * 4,
    )

    seed_arr = jnp.asarray([seed], dtype=jnp.int32)

    out2d = pl.pallas_call(
        kernel,
        out_shape=jax.ShapeDtypeStruct((S, B * C), x.dtype),
        grid_spec=pltpu.PrefetchScalarGridSpec(
            num_scalar_prefetch=1,                   # seed lands in SMEM
            grid=grid,
            in_specs=[
                pl.BlockSpec((row_tile, B * C), lambda i, seed_ref: (i, 0)),
                pl.BlockSpec((row_tile, C), lambda i, seed_ref: (i, 0)),
            ],
            out_specs=pl.BlockSpec((row_tile, B * C), lambda i, seed_ref: (i, 0)),
        ),
        compiler_params=pltpu.CompilerParams(
            dimension_semantics=("parallel",),       # independent S-tiles (v7x 2 TCs)
            vmem_limit_bytes=32 * 1024 * 1024,
        ),
        cost_estimate=cost,
    )(seed_arr, x2d, enc2d)

    return out2d.reshape(S, B, C)


if __name__ == "__main__":
    S, B, C = 8, 2, 32          # seq=8, batch=2, channels=32
    MAX_LEN = 5000

    key = jax.random.PRNGKey(0)
    x = jax.random.normal(key, (S, B, C), dtype=jnp.float32)
    encoding = make_encoding(C, max_len=MAX_LEN)

    # Eval mode: dropout is identity -> exact match with x + encoding[:S].
    y_eval = positional_encoding_forward(x, encoding, p=0.1, training=False)
    y_eval = jax.block_until_ready(y_eval)
    ref = x + encoding[:S]      # (S,1,C) broadcasts over batch
    assert y_eval.shape == (S, B, C)
    assert jnp.allclose(y_eval, ref, atol=1e-6, rtol=1e-6), "eval-mode mismatch"

    # Training mode: kept elements scaled by 1/(1-p), dropped elements are 0.
    y_train = positional_encoding_forward(x, encoding, p=0.1, training=True, seed=1234)
    y_train = jax.block_until_ready(y_train)
    assert y_train.shape == (S, B, C)
    kept = y_train != 0.0
    assert jnp.allclose(
        jnp.where(kept, y_train, 0.0),
        jnp.where(kept, ref / (1.0 - 0.1), 0.0),
        atol=1e-5, rtol=1e-5,
    ), "training-mode mismatch on kept elements"
    drop_frac = 1.0 - float(jnp.mean(kept.astype(jnp.float32)))
    assert 0.0 < drop_frac < 0.5, "dropout rate implausible"

    print("KERNEL_OK")
</pallas_src>

<mosaic_0001>
module attributes {stable_mosaic.version = 11 : i64} {
  func.func @_pe_kernel(%arg0: i32, %arg1: memref<1xi32, #tpu.memory_space<smem>>, %arg2: memref<8x64xf32, #tpu.memory_space<vmem>>, %arg3: memref<8x32xf32, #tpu.memory_space<vmem>>, %arg4: memref<8x64xf32, #tpu.memory_space<vmem>>) attributes {dimension_semantics = [#tpu.dimension_semantics<parallel>], iteration_bounds = array<i64: 1>, scalar_prefetch = 1 : i64, scratch_operands = 0 : i64, tpu.core_type = #tpu.core_type<tc>, window_params = [{transform_indices = @transform_0, window_bounds = array<i64: 8, 64>}, {transform_indices = @transform_1, window_bounds = array<i64: 8, 32>}, {transform_indices = @transform_2, window_bounds = array<i64: 8, 64>}]} {
    %c0 = arith.constant 0 : index
    %c0_0 = arith.constant 0 : index
    %0 = vector.load %arg2[%c0, %c0_0] : memref<8x64xf32, #tpu.memory_space<vmem>>, vector<8x64xf32>
    %c0_1 = arith.constant 0 : index
    %c0_2 = arith.constant 0 : index
    %1 = vector.load %arg3[%c0_1, %c0_2] : memref<8x32xf32, #tpu.memory_space<vmem>>, vector<8x32xf32>
    %2 = tpu.concatenate %1, %1 in 1 : vector<8x32xf32>, vector<8x32xf32> -> vector<8x64xf32>
    %3 = arith.addf %0, %2 : vector<8x64xf32>
    %c0_3 = arith.constant 0 : index
    %c0_4 = arith.constant 0 : index
    %4 = vector.load %arg4[%c0_3, %c0_4] : memref<8x64xf32, #tpu.memory_space<vmem>>, vector<8x64xf32>
    tpu.vector_store %arg4[%c0_3, %c0_4], %3 {strides = array<i32>} : memref<8x64xf32, #tpu.memory_space<vmem>>, vector<8x64xf32>,
    return
  }
  func.func @transform_0(%arg0: i32, %arg1: memref<1xi32, #tpu.memory_space<smem>>) -> (i32, i32) {
    %c0_i32 = arith.constant 0 : i32
    %c0_i32_0 = arith.constant 0 : i32
    return %arg0, %c0_i32 : i32, i32
  }
  func.func @transform_1(%arg0: i32, %arg1: memref<1xi32, #tpu.memory_space<smem>>) -> (i32, i32) {
    %c0_i32 = arith.constant 0 : i32
    %c0_i32_0 = arith.constant 0 : i32
    return %arg0, %c0_i32 : i32, i32
  }
  func.func @transform_2(%arg0: i32, %arg1: memref<1xi32, #tpu.memory_space<smem>>) -> (i32, i32) {
    %c0_i32 = arith.constant 0 : i32
    %c0_i32_0 = arith.constant 0 : i32
    return %arg0, %c0_i32 : i32, i32
  }
}

</mosaic_0001>

<bundles_post_ra>
// kernel: tpu_custom_call.1
= control target key start
LH: loop header
LB: loop body
LE: loop exit
PB: predicated region body
PF: predicated region fallthrough
CT: control target
= control target key end

     0   :  { %9 = vsyncpa [#allocation5], 0  ;;  %s201_s0 = inlined_call_operand.<no memory space> [shape: s32[1], index: 0, kind: input, shape index: {}]   ;;  %s202_s1 = inlined_call_operand.hbm [shape: f32[8,64], index: 1, kind: input, shape index: {}]   ;;  %s203_s2 = inlined_call_operand.hbm [shape: f32[8,32], index: 2, kind: input, shape index: {}]   ;;  %s204_s3 = inlined_call_operand.hbm [shape: f32[8,64], index: 3, kind: output, shape index: {}]  }
   0x1   :  { %10 = vsyncpa [#allocation8], 0 }
   0x2   :  { %11 = vsyncpa [#allocation6], 0  ;;  %s141_s12 = smov [#allocation4]   ;;  %s142_s14 = smov [#allocation7]  }
   0x3   :  { %s18_s13 = sshll.u32 %s141_s12, 4  ;;  %s28_s15 = sshll.u32 %s142_s14, 4  ;;  %s19_s13 = int_to_ptr.vmem [resolvable:$true] %s18_s13  ;;  %s29_s15 = int_to_ptr.vmem [resolvable:$true] %s28_s15 }
   0x4   :  { %s69_s17 = scalar_lea.hbm %s202_s1, 128 }
   0x5   :  { %p70_p0 = scmp.ne.s32.totalorder %s202_s1, %s69_s17  ;;  %p73_p1 = scmp.lt.u32.totalorder %s69_s17, %s202_s1 }
   0x7   :  { %p75_p2 = pnand %p73_p1, %p70_p0 }
   0x9   :  { %78 = shalt.err (!%p75_p2)
}
   0xa   :  { %s79_s22 = scalar_lea.vmem %s19_s13, 128  ;;  %p84_p4 = scmp.lt.s32.totalorder %s19_s13, %s19_s13 }
   0xb   :  { %p80_p3 = scmp.ne.s32.totalorder %s19_s13, %s79_s22  ;;  %p85_p5 = scmp.lt.s32.totalorder %s79_s22, %s79_s22 }
   0xd   :  { %p86_p6 = por %p85_p5, %p84_p4 }
   0xf   :  { %p87_p7 = pnand %p86_p6, %p80_p3 }
  0x11   :  { %90 = shalt.err (!%p87_p7)
}
  0x12   :  { %21 = dma.hbm_to_vmem [thread:$0]  %s202_s1, 128, %s19_s13, [#allocation5]  }
  0x13   :  { %s91_s27 = scalar_lea.hbm %s203_s2, 128 }
  0x14   :  { %p92_p8 = scmp.ne.s32.totalorder %s203_s2, %s91_s27  ;;  %p95_p9 = scmp.lt.u32.totalorder %s91_s27, %s203_s2 }
  0x16   :  { %p97_p10 = pnand %p95_p9, %p92_p8 }
  0x18   :  { %100 = shalt.err (!%p97_p10)
}
  0x19   :  { %s101_s5 = scalar_lea.vmem %s29_s15, 128  ;;  %p106_p12 = scmp.lt.s32.totalorder %s29_s15, %s29_s15 }
  0x1a   :  { %p102_p11 = scmp.ne.s32.totalorder %s29_s15, %s101_s5  ;;  %p107_p13 = scmp.lt.s32.totalorder %s101_s5, %s101_s5 }
  0x1c   :  { %p108_p0 = por %p107_p13, %p106_p12 }
  0x1e   :  { %p109_p1 = pnand %p108_p0, %p102_p11 }
  0x20   :  { %112 = shalt.err (!%p109_p1)
}
  0x21   :  { %31 = dma.hbm_to_vmem [thread:$0]  %s203_s2, 128, %s29_s15, [#allocation8]  }
  0x22   :  { %135 = dma.done.wait [#allocation5], 128  }
  0x23   :  { %136 = vsyncadd [#allocation5], 4294967168 }
  0x24   :  { %137 = dma.done.wait [#allocation8], 128  }
  0x25   :  { %138 = vsyncadd [#allocation8], 4294967168  ;;  %v39_v0 = vld [vmem:[#allocation7] sm:$0xff]  ;;  %s143_s7 = smov 32   ;;  %vm44_vm0 = vcmask 261120   ;;  %v38_v1 = vld [vmem:[#allocation4] sm:$0xff] }
  0x26   :  { %41 = vrot.lane.b32.xlu0 %v39_v0, %s143_s7  ;;  %s144_s8 = smov [#allocation9]   ;;  %vm47_vm1 = vcmask 523264  }
  0x27   :  { %s55_s9 = sshll.u32 %s144_s8, 4  ;;  %s56_s9 = int_to_ptr.vmem [resolvable:$true] %s55_s9 }
  0x28   :  { %s113_s10 = scalar_lea.vmem %s56_s9, 128  ;;  %p118_p3 = scmp.lt.s32.totalorder %s56_s9, %s56_s9 }
  0x29   :  { %p114_p2 = scmp.ne.s32.totalorder %s56_s9, %s113_s10  ;;  %p119_p4 = scmp.lt.s32.totalorder %s113_s10, %s113_s10 }
  0x2b   :  { %p120_p5 = por %p119_p4, %p118_p3 }
  0x2d   :  { %p121_p6 = pnand %p120_p5, %p114_p2 }
  0x98   :  { %v42_v2 = vpop.permute.xlu0 %41 }
  0x99   :  { %v45_v3 = vsel %vm44_vm0, %v39_v0, %v42_v2 }
  0x9a   :  { %v46_v4 = vadd.f32 %v45_v3, %v38_v1 }
  0x9c   :  { %48 = vst.msk [vmem:[#allocation9] sm:$0xff] %vm47_vm1, %v46_v4 }
  0x9d   :  { %124 = shalt.err (!%p121_p6)
}
  0x9e   :  { %s125_s12 = scalar_lea.hbm %s204_s3, 128 }
  0x9f   :  { %p126_p7 = scmp.ne.s32.totalorder %s204_s3, %s125_s12  ;;  %p129_p8 = scmp.lt.u32.totalorder %s125_s12, %s204_s3 }
  0xa1   :  { %p131_p9 = pnand %p129_p8, %p126_p7 }
  0xa3   :  { %134 = shalt.err (!%p131_p9)
}
  0xa4   :  { %58 = dma.vmem_to_hbm [thread:$0]  %s56_s9, 128, %s204_s3, [#allocation6]  }
  0xa5   :  { %139 = dma.done.wait [#allocation6], 128  }
  0xa6   :  { %140 = vsyncadd [#allocation6], 4294967168 }
  0xa7   :  { %62 = vsyncpa [#allocation5], 1 }
  0xa8   :  { %63 = vsyncpa [#allocation8], 1 }
  0xa9   :  { %64 = vsyncpa [#allocation6], 1 }

</bundles_post_ra>
